<compile_context>
chip_gen: v7x
topology: tpu7x:2x2x1
jax: 0.10.0
libtpu: 0.0.40
codegen_flags: <defaults>
</compile_context>

<pallas_src>
import functools
import math

import jax
import jax.numpy as jnp
from jax.experimental import pallas as pl
from jax.experimental.pallas import tpu as pltpu

_MIB = 1024 * 1024


# ----------------------------------------------------------------------------
# Kernel body
# ----------------------------------------------------------------------------
def _llama_mlp_kernel(x_ref, wg_ref, wu_ref, wd_ref, o_ref, acc_ref):
    """One grid step: token tile i (axis 0), intermediate tile j (axis 1).

    Computes acc += (silu(x @ Wg_j) * (x @ Wu_j)) @ Wd_j and flushes the
    accumulator to o_ref on the last j step.
    """
    j = pl.program_id(1)

    @pl.when(j == 0)
    def _():
        acc_ref[...] = jnp.zeros_like(acc_ref)

    x = x_ref[...]                                               # (tm, H)  bf16
    g = jnp.dot(x, wg_ref[...], preferred_element_type=jnp.float32)   # (tm, ti) f32
    u = jnp.dot(x, wu_ref[...], preferred_element_type=jnp.float32)   # (tm, ti) f32
    # SiLU and multiply stay in f32 (only matmul operands are bf16).
    h = (g * jax.nn.sigmoid(g)) * u                              # (tm, ti) f32
    acc_ref[...] += jnp.dot(h.astype(wd_ref.dtype), wd_ref[...],
                            preferred_element_type=jnp.float32)  # (tm, H)  f32

    @pl.when(j == pl.num_programs(1) - 1)
    def _():
        o_ref[...] = acc_ref[...].astype(o_ref.dtype)


# ----------------------------------------------------------------------------
# Generation-aware tile / VMEM selection
# ----------------------------------------------------------------------------
@functools.lru_cache(maxsize=1)
def _tpu_generation():
    """Returns (device_kind_lowercase, vmem_capacity_bytes)."""
    try:
        kind = jax.devices()[0].device_kind.lower()
    except Exception:  # pragma: no cover - defensive
        kind = ""
    vmem_cap = None
    try:
        vmem_cap = int(pltpu.get_tpu_info().vmem_capacity_bytes)
    except Exception:  # pragma: no cover - fall back to a kind-based guess
        vmem_cap = None
    if not vmem_cap:
        vmem_cap = 64 * _MIB if "v7" in kind else 128 * _MIB
    return kind, vmem_cap


def _default_tiles(kind):
    """Per-generation (tm, ti) defaults (see header comment for the roofline)."""
    if "v5" in kind:
        return 256, 256      # already compute-bound at tm=256; keep VMEM small
    if "v7" in kind:
        return 512, 256      # ~310 FLOP/B ridge, only 64 MiB VMEM per TC
    if "v6" in kind:
        return 1024, 256     # ~680 FLOP/B ridge, 128 MiB VMEM
    return 512, 256


def _working_set_bytes(tm, ti, H, c_bytes, o_bytes):
    # Double-buffered per-step blocks + resident f32 accumulator.
    # NOTE: the x block is j-invariant, so pipeline_mode=pl.Buffered(1) on it
    # would save one tm*H*c_bytes buffer; left at the default double-buffering
    # here for maximum portability across Pallas versions.
    return (2 * (tm * H * c_bytes            # x tile
                 + 2 * H * ti * c_bytes      # gate + up weight tiles
                 + ti * H * c_bytes          # down weight tile
                 + tm * H * o_bytes)         # output tile
            + tm * H * 4)                    # f32 accumulator


def _fit_tiles_to_budget(tm, ti, H, c_bytes, o_bytes, budget):
    # Shrink ti first (it does not affect weight reuse), then tm.
    while _working_set_bytes(tm, ti, H, c_bytes, o_bytes) > budget:
        if ti > 256:
            ti //= 2
        elif tm > 256:
            tm //= 2
        else:
            break
    return tm, ti


def _largest_divisor_tile(total, cap, quantum):
    """Largest t <= cap with total % t == 0 and (t % quantum == 0 or t == total)."""
    cap = max(1, min(int(cap), int(total)))
    for t in range(cap, 0, -1):
        if total % t == 0 and (t % quantum == 0 or t == total):
            return t
    return total


# ----------------------------------------------------------------------------
# Weight preparation (call ONCE at weight-load time, not per forward)
# ----------------------------------------------------------------------------
def prepare_llama_mlp_weights(gate_w, up_w, down_w, compute_dtype=jnp.bfloat16):
    """Convert PyTorch-layout nn.Linear weights (out_features, in_features)
    into the kernel layout and MXU dtype.

    Returns (wg, wu, wd) with wg/wu: (hidden, intermediate), wd:
    (intermediate, hidden), dtype=compute_dtype.
    """
    # TODO(synk): for decode-dominated serving, store these as int8 (v5e/v6e)
    # or fp8 (v7x) with a dequant scale applied after the matmul to halve the
    # streamed weight bytes; not implemented here.
    wg = jnp.asarray(gate_w).T.astype(compute_dtype)
    wu = jnp.asarray(up_w).T.astype(compute_dtype)
    wd = jnp.asarray(down_w).T.astype(compute_dtype)
    return wg, wu, wd


# ----------------------------------------------------------------------------
# Public entry point
# ----------------------------------------------------------------------------
@functools.partial(jax.jit, static_argnames=("tm", "ti", "compute_dtype"))
def llama_mlp(x, wg, wu, wd, *, tm=None, ti=None, compute_dtype=jnp.bfloat16):
    """x: (..., H); wg/wu: (H, I); wd: (I, H). Returns (..., H) in x.dtype.

    tm/ti default to generation-aware values and are clamped/fit to the
    problem size and to the chip's VMEM capacity. Matmul operands are
    `compute_dtype` (bf16 by default); accumulation and SiLU are f32.
    """
    orig_shape = x.shape
    H = orig_shape[-1]
    T = int(math.prod(orig_shape[:-1]))
    x2d = x.reshape(T, H)
    I = wg.shape[1]
    out_dtype = x.dtype

    assert wg.shape == (H, I) and wu.shape == (H, I) and wd.shape == (I, H), (
        "weights must be in kernel layout (see prepare_llama_mlp_weights)")

    # Prefer pre-cast weights (prepare_llama_mlp_weights); casts below are
    # no-ops in that case.
    if wg.dtype != compute_dtype:
        wg = wg.astype(compute_dtype)
    if wu.dtype != compute_dtype:
        wu = wu.astype(compute_dtype)
    if wd.dtype != compute_dtype:
        wd = wd.astype(compute_dtype)
    x_c = x2d.astype(compute_dtype)

    c_bytes = jnp.dtype(compute_dtype).itemsize
    o_bytes = jnp.dtype(out_dtype).itemsize

    kind, vmem_cap = _tpu_generation()
    # Leave headroom for compiler-internal scratch: ~110 MiB on 128 MiB parts,
    # ~56 MiB on v7x's 64 MiB.
    vmem_cap_budget = min(vmem_cap - 8 * _MIB, 110 * _MIB)

    d_tm, d_ti = _default_tiles(kind)
    tm = d_tm if tm is None else tm
    ti = d_ti if ti is None else ti

    # Fit the double-buffered working set into the VMEM budget.
    # TODO(synk): for very large H (e.g. 8192-class models on v7x) add a
    # K-tiling over H instead of shrinking tm, so reuse stays high.
    tm, ti = _fit_tiles_to_budget(tm, ti, H, c_bytes, o_bytes,
                                  int(vmem_cap_budget / 1.15))

    # Keep >=2 token tiles when T is big enough so the "parallel" i axis can
    # shard across v7x's two TensorCores.
    if T >= 512:
        tm = min(tm, T // 2)

    tm = _largest_divisor_tile(T, tm, 8)     # sublane quantum
    ti = _largest_divisor_tile(I, ti, 128)   # lane quantum

    assert T % tm == 0 and I % ti == 0
    assert (tm % 8 == 0) or tm == T
    assert (ti % 128 == 0) or ti == I

    grid = (T // tm, I // ti)

    vmem_est = _working_set_bytes(tm, ti, H, c_bytes, o_bytes)
    vmem_limit = int(min(vmem_cap_budget, max(32 * _MIB, 1.2 * vmem_est)))

    # Real traffic: the full weight set is streamed once per token tile.
    n_token_tiles = T // tm
    weight_bytes = (wg.size + wu.size + wd.size) * c_bytes
    cost = pl.CostEstimate(
        flops=6 * T * H * I,                         # gate + up + down matmuls
        transcendentals=T * I,                       # sigmoid
        bytes_accessed=int(n_token_tiles * weight_bytes
                           + T * H * c_bytes         # x read
                           + T * H * o_bytes),       # out written
    )

    out2d = pl.pallas_call(
        _llama_mlp_kernel,
        out_shape=jax.ShapeDtypeStruct((T, H), out_dtype),
        grid_spec=pltpu.PrefetchScalarGridSpec(
            num_scalar_prefetch=0,
            grid=grid,
            in_specs=[
                pl.BlockSpec((tm, H), lambda i, j: (i, 0)),   # x tile (j-invariant)
                pl.BlockSpec((H, ti), lambda i, j: (0, j)),   # gate weight tile
                pl.BlockSpec((H, ti), lambda i, j: (0, j)),   # up weight tile
                pl.BlockSpec((ti, H), lambda i, j: (j, 0)),   # down weight tile
            ],
            out_specs=pl.BlockSpec((tm, H), lambda i, j: (i, 0)),
            scratch_shapes=[pltpu.VMEM((tm, H), jnp.float32)],
        ),
        compiler_params=pltpu.CompilerParams(
            dimension_semantics=("parallel", "arbitrary"),
            vmem_limit_bytes=vmem_limit,
        ),
        cost_estimate=cost,
    )(x_c, wg, wu, wd)

    return out2d.reshape(orig_shape)


# ----------------------------------------------------------------------------
# References
# ----------------------------------------------------------------------------
def reference_mlp_f32(x, wg, wu, wd):
    g = x @ wg
    u = x @ wu
    return (jax.nn.silu(g) * u) @ wd


def reference_mlp_matched(x, wg, wu, wd, compute_dtype=jnp.bfloat16):
    """Same bf16-operand / f32-accumulate recipe as the kernel."""
    xc = x.astype(compute_dtype)
    g = jnp.dot(xc, wg.astype(compute_dtype), preferred_element_type=jnp.float32)
    u = jnp.dot(xc, wu.astype(compute_dtype), preferred_element_type=jnp.float32)
    h = ((g * jax.nn.sigmoid(g)) * u).astype(compute_dtype)
    out = jnp.dot(h, wd.astype(compute_dtype), preferred_element_type=jnp.float32)
    return out.astype(x.dtype)


def _max_rel_err(a, b):
    a = jnp.asarray(a, jnp.float32)
    b = jnp.asarray(b, jnp.float32)
    return float(jnp.max(jnp.abs(a - b)) / (jnp.max(jnp.abs(b)) + 1e-30))


if __name__ == "__main__":
    # Small config consistent with LlamaMLP: hidden=256, intermediate=512.
    batch, seq, hidden, intermediate = 2, 8, 256, 512

    key = jax.random.PRNGKey(0)
    kx, kg, ku, kd = jax.random.split(key, 4)

    x = jax.random.normal(kx, (batch, seq, hidden), dtype=jnp.float32)
    # PyTorch nn.Linear layout: weight is (out_features, in_features),
    # initializer_range=0.02-style scaling.
    gate_w = jax.random.normal(kg, (intermediate, hidden), dtype=jnp.float32) * 0.02
    up_w = jax.random.normal(ku, (intermediate, hidden), dtype=jnp.float32) * 0.02
    down_w = jax.random.normal(kd, (hidden, intermediate), dtype=jnp.float32) * 0.02

    # One-time weight preparation (transpose + bf16 cast), hoisted out of the
    # per-call path.
    wg_c, wu_c, wd_c = prepare_llama_mlp_weights(gate_w, up_w, down_w)
    # f32 weights in kernel layout, for the references.
    wg_f, wu_f, wd_f = gate_w.T, up_w.T, down_w.T

    # 1) Default (generation-aware, perf-tuned) tiles, auto-clamped.
    out = jax.block_until_ready(llama_mlp(x, wg_c, wu_c, wd_c))

    # 2) Small tiles to exercise the multi-step grid / j-axis accumulation path.
    out_tiled = jax.block_until_ready(llama_mlp(x, wg_c, wu_c, wd_c, tm=8, ti=128))

    ref_m = reference_mlp_matched(x, wg_f, wu_f, wd_f)
    ref_f32 = reference_mlp_f32(x, wg_f, wu_f, wd_f)

    assert out.shape == (batch, seq, hidden)
    assert out.dtype == x.dtype
    assert out_tiled.shape == (batch, seq, hidden)

    # Tighter, relative-error based checks (the old atol=1e-2 on 0.02-scale
    # outputs was too loose to catch accumulation bugs).
    err_m = _max_rel_err(out, ref_m)
    err_mt = _max_rel_err(out_tiled, ref_m)
    err_f = _max_rel_err(out, ref_f32)
    assert err_m < 5e-3, f"mismatch vs matched-precision ref: rel={err_m}"
    assert err_mt < 5e-3, f"tiled mismatch vs matched-precision ref: rel={err_mt}"
    assert err_f < 3e-2, f"mismatch vs f32 ref: rel={err_f}"

    print("KERNEL_OK")
</pallas_src>

<mosaic_0001>
module attributes {stable_mosaic.version = 11 : i64} {
  func.func @_llama_mlp_kernel(%arg0: i32, %arg1: i32, %arg2: memref<16x256xbf16, #tpu.memory_space<vmem>>, %arg3: memref<256x256xbf16, #tpu.memory_space<vmem>>, %arg4: memref<256x256xbf16, #tpu.memory_space<vmem>>, %arg5: memref<256x256xbf16, #tpu.memory_space<vmem>>, %arg6: memref<16x256xf32, #tpu.memory_space<vmem>>, %arg7: memref<16x256xf32, #tpu.memory_space<vmem>>) attributes {dimension_semantics = [#tpu.dimension_semantics<parallel>, #tpu.dimension_semantics<arbitrary>], iteration_bounds = array<i64: 1, 2>, scalar_prefetch = 0 : i64, scratch_operands = 1 : i64, tpu.core_type = #tpu.core_type<tc>, window_params = [{transform_indices = @transform_0, window_bounds = array<i64: 16, 256>}, {transform_indices = @transform_1, window_bounds = array<i64: 256, 256>}, {transform_indices = @transform_2, window_bounds = array<i64: 256, 256>}, {transform_indices = @transform_3, window_bounds = array<i64: 256, 256>}, {transform_indices = @transform_4, window_bounds = array<i64: 16, 256>}]} {
    %c0_i32 = arith.constant 0 : i32
    %0 = arith.cmpi eq, %arg1, %c0_i32 : i32
    %1 = arith.extui %0 : i1 to i32
    %c0_i32_0 = arith.constant 0 : i32
    %2 = arith.cmpi ne, %1, %c0_i32_0 : i32
    scf.if %2 {
      %cst_16 = arith.constant 0.000000e+00 : f32
      %24 = vector.broadcast %cst_16 : f32 to vector<16x256xf32>
      %c0_17 = arith.constant 0 : index
      %c0_18 = arith.constant 0 : index
      %25 = vector.load %arg7[%c0_17, %c0_18] : memref<16x256xf32, #tpu.memory_space<vmem>>, vector<16x256xf32>
      tpu.vector_store %arg7[%c0_17, %c0_18], %24 {strides = array<i32>} : memref<16x256xf32, #tpu.memory_space<vmem>>, vector<16x256xf32>,
    } else {
    }
    %c0 = arith.constant 0 : index
    %c0_1 = arith.constant 0 : index
    %3 = vector.load %arg2[%c0, %c0_1] : memref<16x256xbf16, #tpu.memory_space<vmem>>, vector<16x256xbf16>
    %c0_2 = arith.constant 0 : index
    %c0_3 = arith.constant 0 : index
    %4 = vector.load %arg3[%c0_2, %c0_3] : memref<256x256xbf16, #tpu.memory_space<vmem>>, vector<256x256xbf16>
    %cst = arith.constant dense<0.000000e+00> : vector<16x256xf32>
    %5 = tpu.matmul %3, %4, %cst {dimension_numbers = #tpu.dot_dimension_numbers<[1], [0], [0], [1], [0, 0, 1, 1], [], []>} : vector<16x256xbf16>, vector<256x256xbf16>, vector<16x256xf32> -> vector<16x256xf32>
    %c0_4 = arith.constant 0 : index
    %c0_5 = arith.constant 0 : index
    %6 = vector.load %arg4[%c0_4, %c0_5] : memref<256x256xbf16, #tpu.memory_space<vmem>>, vector<256x256xbf16>
    %cst_6 = arith.constant dense<0.000000e+00> : vector<16x256xf32>
    %7 = tpu.matmul %3, %6, %cst_6 {dimension_numbers = #tpu.dot_dimension_numbers<[1], [0], [0], [1], [0, 0, 1, 1], [], []>} : vector<16x256xbf16>, vector<256x256xbf16>, vector<16x256xf32> -> vector<16x256xf32>
    %8 = arith.negf %5 : vector<16x256xf32>
    %9 = math.exp %8 : vector<16x256xf32>
    %cst_7 = arith.constant 1.000000e+00 : f32
    %10 = vector.broadcast %cst_7 : f32 to vector<16x256xf32>
    %11 = arith.addf %10, %9 : vector<16x256xf32>
    %12 = arith.divf %10, %11 : vector<16x256xf32>
    %13 = arith.mulf %5, %12 : vector<16x256xf32>
    %14 = arith.mulf %13, %7 : vector<16x256xf32>
    %c0_8 = arith.constant 0 : index
    %c0_9 = arith.constant 0 : index
    %15 = vector.load %arg7[%c0_8, %c0_9] : memref<16x256xf32, #tpu.memory_space<vmem>>, vector<16x256xf32>
    %16 = arith.truncf %14 : vector<16x256xf32> to vector<16x256xbf16>
    %c0_10 = arith.constant 0 : index
    %c0_11 = arith.constant 0 : index
    %17 = vector.load %arg5[%c0_10, %c0_11] : memref<256x256xbf16, #tpu.memory_space<vmem>>, vector<256x256xbf16>
    %cst_12 = arith.constant dense<0.000000e+00> : vector<16x256xf32>
    %18 = tpu.matmul %16, %17, %cst_12 {dimension_numbers = #tpu.dot_dimension_numbers<[1], [0], [0], [1], [0, 0, 1, 1], [], []>} : vector<16x256xbf16>, vector<256x256xbf16>, vector<16x256xf32> -> vector<16x256xf32>
    %19 = arith.addf %15, %18 : vector<16x256xf32>
    %c0_13 = arith.constant 0 : index
    %c0_14 = arith.constant 0 : index
    %20 = vector.load %arg7[%c0_13, %c0_14] : memref<16x256xf32, #tpu.memory_space<vmem>>, vector<16x256xf32>
    tpu.vector_store %arg7[%c0_13, %c0_14], %19 {strides = array<i32>} : memref<16x256xf32, #tpu.memory_space<vmem>>, vector<16x256xf32>,
    %c1_i32 = arith.constant 1 : i32
    %21 = arith.cmpi eq, %arg1, %c1_i32 : i32
    %22 = arith.extui %21 : i1 to i32
    %c0_i32_15 = arith.constant 0 : i32
    %23 = arith.cmpi ne, %22, %c0_i32_15 : i32
    scf.if %23 {
      %c0_16 = arith.constant 0 : index
      %c0_17 = arith.constant 0 : index
      %24 = vector.load %arg7[%c0_16, %c0_17] : memref<16x256xf32, #tpu.memory_space<vmem>>, vector<16x256xf32>
      %c0_18 = arith.constant 0 : index
      %c0_19 = arith.constant 0 : index
      %25 = vector.load %arg6[%c0_18, %c0_19] : memref<16x256xf32, #tpu.memory_space<vmem>>, vector<16x256xf32>
      tpu.vector_store %arg6[%c0_18, %c0_19], %24 {strides = array<i32>} : memref<16x256xf32, #tpu.memory_space<vmem>>, vector<16x256xf32>,
    } else {
    }
    return
  }
  func.func @transform_0(%arg0: i32, %arg1: i32) -> (i32, i32) {
    %c0_i32 = arith.constant 0 : i32
    %c0_i32_0 = arith.constant 0 : i32
    return %arg0, %c0_i32 : i32, i32
  }
  func.func @transform_1(%arg0: i32, %arg1: i32) -> (i32, i32) {
    %c0_i32 = arith.constant 0 : i32
    %c0_i32_0 = arith.constant 0 : i32
    return %c0_i32, %arg1 : i32, i32
  }
  func.func @transform_2(%arg0: i32, %arg1: i32) -> (i32, i32) {
    %c0_i32 = arith.constant 0 : i32
    %c0_i32_0 = arith.constant 0 : i32
    return %c0_i32, %arg1 : i32, i32
  }
  func.func @transform_3(%arg0: i32, %arg1: i32) -> (i32, i32) {
    %c0_i32 = arith.constant 0 : i32
    %c0_i32_0 = arith.constant 0 : i32
    return %arg1, %c0_i32 : i32, i32
  }
  func.func @transform_4(%arg0: i32, %arg1: i32) -> (i32, i32) {
    %c0_i32 = arith.constant 0 : i32
    %c0_i32_0 = arith.constant 0 : i32
    return %arg0, %c0_i32 : i32, i32
  }
}

</mosaic_0001>

<bundles_post_ra>
// kernel: llama_mlp.1
= control target key start
LH: loop header
LB: loop body
LE: loop exit
PB: predicated region body
PF: predicated region fallthrough
CT: control target
= control target key end

     0   :  { %s2177_s0 = inlined_call_operand.vmem [shape: bf16[16,256], index: 0, kind: input, shape index: {}]   ;;  %s2178_s1 = inlined_call_operand.hbm [shape: bf16[256,512], index: 1, kind: input, shape index: {}]   ;;  %s2179_s2 = inlined_call_operand.hbm [shape: bf16[256,512], index: 2, kind: input, shape index: {}]   ;;  %s2180_s3 = inlined_call_operand.hbm [shape: bf16[512,256], index: 3, kind: input, shape index: {}]   ;;  %s2181_s4 = inlined_call_operand.hbm [shape: f32[16,256], index: 4, kind: output, shape index: {}]  }
   0x1   :  { %2188 = sst [smem:[#allocation13_spill]] %s2178_s1 }
   0x2   :  { %9 = vsyncpa [#allocation4], 0 }
   0x3   :  { %11 = vsyncpa [#allocation4 + $0x1], 0 }
   0x4   :  { %12 = vsyncpa [#allocation7], 0 }
   0x5   :  { %14 = vsyncpa [#allocation7 + $0x1], 0 }
   0x6   :  { %15 = vsyncpa [#allocation5], 0  ;;  %s1825_s15 = smov 0   ;;  %s1827_s16 = smov 0  }
   0x7   :  { %s1829_s17 = smov 0   ;;  %s1831_s18 = smov 0  }
   0x8   :  { %s1833_s19 = smov 0   ;;  %s1835_s20 = smov 0  }
   0x9 LB: > { %s1854_s21 = sadd.s32 4294967295, %s1788_s20   ;;  %s30_s22 = sadd.s32 1, %s1784_s19  ;;  %s1788_s20 = sphi %s1835_s20, %s21_s20   ;;  %s1784_s19 = sphi %s1833_s19, %s2205_s19   ;;  %s1780_s18 = sphi %s1831_s18, %s2204_s18   ;;  %s1776_s17 = sphi %s1829_s17, %s2203_s17   ;;  %s1772_s16 = sphi %s1827_s16, %s2202_s16   ;;  %s1768_s15 = sphi %s1825_s15, %s2201_s15  }
   0xa   : > { %p31_p0 = scmp.ge.s32.totalorder %s30_s22, 2  ;;  %s66_s23 = sadd.s32 1, %s1776_s17 }
   0xb   : > { %p73_p1 = scmp.ne.s32.totalorder %s1776_s17, %s1772_s16  ;;  %p74_p2 = scmp.eq.s32.totalorder %s1788_s20, 0 }
   0xc   : > { %s2207_s22 = smov (%p31_p0, %s30_s22), 0  ;;  %p79_p4 = scmp.ne.s32.totalorder %s1772_s16, %s1768_s15 }
   0xd   : > { %p75_p3 = por %p74_p2, %p73_p1  ;;  %s63_s24 = ssub.s32 %s1784_s19, %s2207_s22 }
   0xe   : > { %p80_p5 = scmp.eq.s32.totalorder %s1854_s21, 0  ;;  %p64_p6 = scmp.eq.s32.totalorder %s63_s24, 0 }
   0xf   : > { %p1393_p8 = scmp.lt.s32.totalorder %s1788_s20, 2  ;;  %s191_s27 = sand.u32 1, %s1776_s17  }
  0x10   : > { %p1867_p7 = por %p80_p5, %p79_p4  ;;  %s1369_s28 = sshll.u32 %s1784_s19, 7 }
  0x11   : > { %s1873_s26 = scalar_select %p64_p6, %s1776_s17, %s66_s23  }
  0x12   : > { %s2189_s25 = scalar_select %p1867_p7, 1, 0 }
  0x13   : > { %s1879_s29 = sshll.u32 %s191_s27, 8  ;;  %p1881_p9 = pnand %p1393_p8, %p75_p3 }
  0x14   : > { %s212_s5 = sand.u32 1, %s1788_s20   ;;  %s1891_s8 = scalar_lea.hbm %s2179_s2, %s1369_s28 }
  0x15   : > { %s216_s9 = scalar_lea.vmem [#allocation6], %s1879_s29  ;;  %s1898_s11 = scalar_lea.sflag [#allocation7], %s212_s5 }
  0x16   : > { %s223_s10 = sshll.u32 %s216_s9, 4  ;;  %s1614_s12 = scalar_lea.hbm %s1891_s8, 4096  ;;  %s1895_s10 = int_to_ptr.vmem [resolvable:$true] %s223_s10 }
  0x17   : > { %p1615_p12 = scmp.ne.s32.totalorder %s1891_s8, %s1614_s12  ;;  %p1904_p13 = pneg %p1881_p9 }
  0x18   : > { %s1619_s23 = scalar_lea.hbm %s2179_s2, 8192  ;;  %p1620_p2 = scmp.lt.u32.totalorder %s1891_s8, %s2179_s2 }
  0x19   : > { %p1617_p0 = pnand %p1904_p13, %p1615_p12  ;;  %p1621_p3 = scmp.lt.u32.totalorder %s1619_s23, %s1614_s12 }
  0x1a   : > { %p1623_p5 = scmp.lt.u32.totalorder %s1614_s12, %s1891_s8 }
  0x1b   : > { %p1618_p1 = pneg %p1617_p0  ;;  %p1622_p4 = por %p1621_p3, %p1620_p2 }
  0x1d   : > { %p1624_p6 = por %p1623_p5, %p1622_p4 }
  0x1f   : > { %p1625_p8 = pnand %p1624_p6, %p1618_p1 }
  0x21   : > { %1628 = shalt.err (!%p1625_p8)
}
  0x22   : > { %s1629_s5 = scalar_lea.vmem %s1895_s10, 4096  ;;  %s1790_s7 = smov [#allocation6]  }
  0x23   : > { %p1630_p12 = scmp.ne.s32.totalorder %s1895_s10, %s1629_s5  ;;  %s1634_s9 = sshll.u32 %s1790_s7, 4  ;;  %s1635_s9 = int_to_ptr.vmem [resolvable:$false] %s1634_s9 }
  0x24   : > { %s1636_s14 = scalar_lea.vmem %s1635_s9, 8192  ;;  %p1637_p11 = scmp.lt.s32.totalorder %s1895_s10, %s1635_s9 }
  0x25   : > { %p1632_p0 = pnand %p1630_p12, %p1904_p13  ;;  %p1638_p7 = scmp.lt.s32.totalorder %s1636_s14, %s1629_s5 }
  0x27   : > { %p1633_p10 = pneg %p1632_p0  ;;  %p1639_p2 = por %p1638_p7, %p1637_p11 }
  0x29   : > { %p1640_p3 = pnand %p1639_p2, %p1633_p10 }
  0x2b   : > { %1643 = shalt.err (!%p1640_p3)
}
  0x2c   : > { %s2183_s12 = smov 256   ;;  %s2184_s15 = smov 128  }
  0x2d   : > { %s2186_s23 = smov 8   ;;  %p2192_p7 = scmp.lt.s32.totalorder %s1788_s20, 3 }
  0x2e   : > { %1389 = dma.hbm_to_vmem [thread:$0]  (!%p1881_p9), %s1891_s8, 4096, %s1895_s10, %s1898_s11, %s2183_s12, %s2184_s15, %s2186_s23  }
  0x2f   : > { %p2193_p10 = scmp.ge.s32.totalorder %s1788_s20, 1  ;;  %s2195_s1 = sld [smem:[#allocation13_spill]] }
  0x30   : > { %s195_s9 = scalar_lea.vmem [#allocation3], %s1879_s29  ;;  %s1372_s8 = sshll.u32 %s1784_s19, 12 }
  0x31   : > { %p1935_p11 = pnand %p2193_p10, %p2192_p7  ;;  %s202_s14 = sshll.u32 %s195_s9, 4  ;;  %s1947_s14 = int_to_ptr.vmem [resolvable:$true] %s202_s14 }
  0x32   : > { %s1952_s10 = scalar_lea.sflag [#allocation4], %s191_s27 }
  0x33   : > { %s2194_s24 = scalar_select %p1935_p11, 1, 0 }
  0x35   : > { %s1944_s7 = scalar_lea.hbm %s2195_s1, %s1369_s28  ;;  %s1649_s5 = scalar_lea.hbm %s2195_s1, 8192 }
  0x36   : > { %s1644_s12 = scalar_lea.hbm %s1944_s7, 4096  ;;  %p1650_p6 = scmp.lt.u32.totalorder %s1944_s7, %s2195_s1 }
  0x37   : > { %p1645_p1 = scmp.ne.s32.totalorder %s1944_s7, %s1644_s12  ;;  %p1651_p8 = scmp.lt.u32.totalorder %s1649_s5, %s1644_s12 }
  0x38   : > { %p1653_p0 = scmp.lt.u32.totalorder %s1644_s12, %s1944_s7 }
  0x39   : > { %p1647_p4 = pnand %p1645_p1, %p1904_p13  ;;  %p1652_p12 = por %p1651_p8, %p1650_p6 }
  0x3b   : > { %p1648_p5 = pneg %p1647_p4  ;;  %p1654_p2 = por %p1653_p0, %p1652_p12 }
  0x3d   : > { %p1655_p3 = pnand %p1654_p2, %p1648_p5 }
  0x3f   : > { %1658 = shalt.err (!%p1655_p3)
}
  0x40   : > { %s1659_s27 = scalar_lea.vmem %s1947_s14, 4096  ;;  %s1794_s9 = smov [#allocation3]  }
  0x41   : > { %p1660_p7 = scmp.ne.s32.totalorder %s1947_s14, %s1659_s27  ;;  %s1664_s6 = sshll.u32 %s1794_s9, 4  ;;  %s1665_s6 = int_to_ptr.vmem [resolvable:$false] %s1664_s6 }
  0x42   : > { %s1666_s15 = scalar_lea.vmem %s1665_s6, 8192  ;;  %p1667_p4 = scmp.lt.s32.totalorder %s1947_s14, %s1665_s6 }
  0x43   : > { %p1662_p10 = pnand %p1660_p7, %p1904_p13  ;;  %p1668_p11 = scmp.lt.s32.totalorder %s1666_s15, %s1659_s27 }
  0x45   : > { %p1663_p1 = pneg %p1662_p10  ;;  %p1669_p6 = por %p1668_p11, %p1667_p4 }
  0x47   : > { %p1670_p8 = pnand %p1669_p6, %p1663_p1 }
  0x49   : > { %1673 = shalt.err (!%p1670_p8)
}
  0x4a   : > { %s2196_s12 = smov 8   ;;  %s2197_s23 = smov 128  }
  0x4b   : > { %s2198_s28 = smov 256   ;;  %s1984_s27 = scalar_lea.hbm %s2180_s3, %s1372_s8 }
  0x4c   : > { %1386 = dma.hbm_to_vmem [thread:$0]  (!%p1881_p9), %s1944_s7, 4096, %s1947_s14, %s1952_s10, %s2198_s28, %s2197_s23, %s2196_s12  }
  0x4d   : > { %s237_s6 = scalar_lea.vmem [#allocation8], %s1879_s29  ;;  %s1674_s1 = scalar_lea.hbm %s1984_s27, 4096 }
  0x4e   : > { %s245_s15 = sshll.u32 %s237_s6, 4  ;;  %p1675_p11 = scmp.ne.s32.totalorder %s1984_s27, %s1674_s1  ;;  %s1987_s15 = int_to_ptr.vmem [resolvable:$true] %s245_s15 }
  0x4f   : > { %s1679_s10 = scalar_lea.hbm %s2180_s3, 8192  ;;  %p1680_p0 = scmp.lt.u32.totalorder %s1984_s27, %s2180_s3 }
  0x50   : > { %p1677_p5 = pnand %p1675_p11, %p1904_p13  ;;  %p1681_p2 = scmp.lt.u32.totalorder %s1679_s10, %s1674_s1 }
  0x51   : > { %p1683_p7 = scmp.lt.u32.totalorder %s1674_s1, %s1984_s27 }
  0x52   : > { %p1678_p12 = pneg %p1677_p5  ;;  %p1682_p3 = por %p1681_p2, %p1680_p0 }
  0x54   : > { %p1684_p10 = por %p1683_p7, %p1682_p3 }
  0x56   : > { %p1685_p1 = pnand %p1684_p10, %p1678_p12 }
  0x58   : > { %1688 = shalt.err (!%p1685_p1)
}
  0x59   : > { %s1689_s29 = scalar_lea.vmem %s1987_s15, 4096  ;;  %s1795_s5 = smov [#allocation8]  }
  0x5a   : > { %p1690_p4 = scmp.ne.s32.totalorder %s1987_s15, %s1689_s29  ;;  %s1694_s9 = sshll.u32 %s1795_s5, 4  ;;  %s1695_s9 = int_to_ptr.vmem [resolvable:$false] %s1694_s9 }
  0x5b   : > { %s1696_s6 = scalar_lea.vmem %s1695_s9, 8192  ;;  %p1697_p11 = scmp.lt.s32.totalorder %s1987_s15, %s1695_s9 }
  0x5c   : > { %p1692_p6 = pnand %p1690_p4, %p1904_p13  ;;  %p1698_p5 = scmp.lt.s32.totalorder %s1696_s6, %s1689_s29 }
  0x5e   : > { %p1693_p8 = pneg %p1692_p6  ;;  %p1699_p0 = por %p1698_p5, %p1697_p11 }
  0x60   : > { %p1700_p2 = pnand %p1699_p0, %p1693_p8 }
  0x62   : > { %1703 = shalt.err (!%p1700_p2)
}
  0x63   : > { %1392 = dma.hbm_to_vmem [thread:$0]  (!%p1881_p9), %s1984_s27, 4096, %s1987_s15, %s1898_s11, %s2197_s23, %s2197_s23, %s2196_s12  }
  0x64   : > { %p2199_p13 = scmp.ne.s32.totalorder %s2194_s24, 0 }
  0x65   : > { %s259_s1 = sand.u32 (!%p2199_p13), 1, %s1772_s16   ;;  %p2200_p12 = scmp.ne.s32.totalorder (!%p2199_p13), %s2189_s25, 0 }
  0x66   : > { %257 = sbr.rel (%p2199_p13) target bundleno = 687 (0x2af), region = 36  ;;  %s1258_s13 = sshll.u32 (!%p2199_p13), %s259_s1, 8 }
  0x67   : > { %s260_s7 = scalar_lea.sflag (!%p2199_p13), [#allocation4], %s259_s1  ;;  %s2017_s14 = scalar_lea.vmem (!%p2199_p13), [#allocation3], %s1258_s13 }
  0x6d   : > { %1755 = dma.done.wait (%p2200_p12), %s260_s7, 4096  }
  0x6e   : > { %1757 = vsyncadd (%p2200_p12), %s260_s7, 4294963200  ;;  %s268_s30 = sand.u32 1, %s1854_s21   ;;  %s2024_s11 = scalar_lea.vmem [#allocation6], %s1258_s13 }
  0x6f   : > { %s269_s10 = scalar_lea.sflag [#allocation7], %s268_s30 }
  0x70   : > { %1759 = dma.done.wait (%p2200_p12), %s269_s10, 8192  }
  0x71   : > { %1761 = vsyncadd (%p2200_p12), %s269_s10, 4294959104  ;;  %s2030_s24 = scalar_lea.vmem [#allocation8], %s1258_s13  ;;  %p1261_p9 = scmp.ne.s32.totalorder %s1780_s18, 0 }
  0x72   : > { %v1796_v0 = vmov (!%p1261_p9), 0.0  }
  0x73   : > { %331 = sbr.rel (%p1261_p9) target bundleno = 122 (0x7a), region = 52  ;;  %332 = vst [vmem:[#allocation2] sm:$0xff] (!%p1261_p9), %v1796_v0  ;;  %333 = vst [vmem:[#allocation2 + $0x8] sm:$0xff] (!%p1261_p9), %v1796_v0 }
  0x74   : > { %334 = vst [vmem:[#allocation2 + $0x10] sm:$0xff] (!%p1261_p9), %v1796_v0  ;;  %335 = vst [vmem:[#allocation2 + $0x18] sm:$0xff] (!%p1261_p9), %v1796_v0 }
  0x7a PF: > { %v1451_v1 = vld [vmem:[%s2017_s14 + $0x4] ss:$8 sps:$4 sm:$0xff]   ;;  %v1453_v2 = vld [vmem:[%s2017_s14] ss:$8 sps:$4 sm:$0xff]   ;;  %v1454_v3 = vld [vmem:[%s2017_s14 + $0x14] ss:$8 sps:$4 sm:$0xff]  }
  0x7b   : > { %540 = vmatprep.subr.bf16.mxu0 %v1451_v1  ;;  %v1456_v4 = vld [vmem:[%s2017_s14 + $0x10] ss:$8 sps:$4 sm:$0xff]   ;;  %v1457_v5 = vld [vmem:[%s2017_s14 + $0x24] ss:$8 sps:$4 sm:$0xff]   ;;  %v1459_v6 = vld [vmem:[%s2017_s14 + $0x20] ss:$8 sps:$4 sm:$0xff]  }
  0x7c   : > { %541 = vmatpush1.bf16.msra.mxu0 %v1453_v2  ;;  %v1460_v7 = vld [vmem:[%s2017_s14 + $0x34] ss:$8 sps:$4 sm:$0xff]   ;;  %v1472_v8 = vld [vmem:[%s2024_s11 + $0x4] ss:$8 sps:$4 sm:$0xff]   ;;  %v1474_v9 = vld [vmem:[%s2024_s11] ss:$8 sps:$4 sm:$0xff]  }
  0x7d   : > { %542 = vmatprep.subr.bf16.mxu0 %v1454_v3  ;;  %v1462_v10 = vld [vmem:[%s2017_s14 + $0x30] ss:$8 sps:$4 sm:$0xff]   ;;  %v1463_v11 = vld [vmem:[%s2017_s14 + $0x44] ss:$8 sps:$4 sm:$0xff]   ;;  %775 = vmatprep.subr.bf16.mxu1 %v1472_v8  ;;  %v1478_v12 = vld [vmem:[%s2024_s11 + $0x14] ss:$8 sps:$4 sm:$0xff]  }
  0x7e   : > { %776 = vmatpush1.bf16.msra.mxu1 %v1474_v9  ;;  %v1480_v13 = vld [vmem:[%s2024_s11 + $0x10] ss:$8 sps:$4 sm:$0xff]   ;;  %v1465_v14 = vld [vmem:[%s2017_s14 + $0x40] ss:$8 sps:$4 sm:$0xff]   ;;  %v1484_v15 = vld [vmem:[%s2024_s11 + $0x24] ss:$8 sps:$4 sm:$0xff]  }
  0x7f   : > { %777 = vmatprep.subr.bf16.mxu1 %v1478_v12  ;;  %v1466_v16 = vld [vmem:[%s2017_s14 + $0x54] ss:$8 sps:$4 sm:$0xff]   ;;  %v1486_v17 = vld [vmem:[%s2024_s11 + $0x20] ss:$8 sps:$4 sm:$0xff]   ;;  %v1468_v19 = vld [vmem:[%s2017_s14 + $0x50] ss:$8 sps:$4 sm:$0xff]  }
  0x80   : > { %543 = vmatpush1.bf16.msra.mxu0 %v1456_v4  ;;  %v1490_v18 = vld [vmem:[%s2024_s11 + $0x34] ss:$8 sps:$4 sm:$0xff]   ;;  %v1469_v20 = vld [vmem:[%s2017_s14 + $0x64] ss:$8 sps:$4 sm:$0xff]   ;;  %v1492_v21 = vld [vmem:[%s2024_s11 + $0x30] ss:$8 sps:$4 sm:$0xff]  }
  0x81   : > { %544 = vmatprep.subr.bf16.mxu0 %v1457_v5  ;;  %v1496_v22 = vld [vmem:[%s2024_s11 + $0x44] ss:$8 sps:$4 sm:$0xff]   ;;  %v1471_v23 = vld [vmem:[%s2017_s14 + $0x60] ss:$8 sps:$4 sm:$0xff]   ;;  %v1475_v24 = vld [vmem:[%s2017_s14 + $0x74] ss:$8 sps:$4 sm:$0xff]  }
  0x82   : > { %778 = vmatpush1.bf16.msra.mxu1 %v1480_v13  ;;  %v1498_v25 = vld [vmem:[%s2024_s11 + $0x40] ss:$8 sps:$4 sm:$0xff]   ;;  %v1502_v26 = vld [vmem:[%s2024_s11 + $0x54] ss:$8 sps:$4 sm:$0xff]   ;;  %v1477_v27 = vld [vmem:[%s2017_s14 + $0x70] ss:$8 sps:$4 sm:$0xff]  }
  0x83   : > { %779 = vmatprep.subr.bf16.mxu1 %v1484_v15  ;;  %v1481_v28 = vld [vmem:[%s2017_s14 + $0x84] ss:$8 sps:$4 sm:$0xff]   ;;  %v1504_v29 = vld [vmem:[%s2024_s11 + $0x50] ss:$8 sps:$4 sm:$0xff]   ;;  %v1483_v31 = vld [vmem:[%s2017_s14 + $0x80] ss:$8 sps:$4 sm:$0xff]  }
  0x84   : > { %545 = vmatpush1.bf16.msra.mxu0 %v1459_v6  ;;  %v1508_v30 = vld [vmem:[%s2024_s11 + $0x64] ss:$8 sps:$4 sm:$0xff]   ;;  %v1487_v32 = vld [vmem:[%s2017_s14 + $0x94] ss:$8 sps:$4 sm:$0xff]   ;;  %v1510_v33 = vld [vmem:[%s2024_s11 + $0x60] ss:$8 sps:$4 sm:$0xff]  }
  0x85   : > { %546 = vmatprep.subr.bf16.mxu0 %v1460_v7  ;;  %v1514_v34 = vld [vmem:[%s2024_s11 + $0x74] ss:$8 sps:$4 sm:$0xff]   ;;  %v1489_v35 = vld [vmem:[%s2017_s14 + $0x90] ss:$8 sps:$4 sm:$0xff]   ;;  %v1493_v37 = vld [vmem:[%s2017_s14 + $0xa4] ss:$8 sps:$4 sm:$0xff]  }
  0x86   : > { %780 = vmatpush1.bf16.msra.mxu1 %v1486_v17  ;;  %v1531_v36 = vld [vmem:[%s2177_s0 + $0x4] ss:$8 sps:$4 sm:$0xff]   ;;  %v1516_v38 = vld [vmem:[%s2024_s11 + $0x70] ss:$8 sps:$4 sm:$0xff]   ;;  %v1520_v39 = vld [vmem:[%s2024_s11 + $0x84] ss:$8 sps:$4 sm:$0xff]  }
  0x87   : > { %781 = vmatprep.subr.bf16.mxu1 %v1490_v18  ;;  %572 = vmatprep.mubr.bf16.mxu0 %v1531_v36  ;;  %v1495_v40 = vld [vmem:[%s2017_s14 + $0xa0] ss:$8 sps:$4 sm:$0xff]   ;;  %v1499_v41 = vld [vmem:[%s2017_s14 + $0xb4] ss:$8 sps:$4 sm:$0xff]   ;;  %v1501_v44 = vld [vmem:[%s2017_s14 + $0xb0] ss:$8 sps:$4 sm:$0xff]  }
  0x88   : > { %547 = vmatpush1.bf16.msra.mxu0 %v1462_v10  ;;  %807 = vmatprep.mubr.bf16.mxu1 %v1531_v36  ;;  %v1522_v42 = vld [vmem:[%s2024_s11 + $0x80] ss:$8 sps:$4 sm:$0xff]   ;;  %v1526_v43 = vld [vmem:[%s2024_s11 + $0x94] ss:$8 sps:$4 sm:$0xff]   ;;  %v1505_v45 = vld [vmem:[%s2017_s14 + $0xc4] ss:$8 sps:$4 sm:$0xff]  }
  0x89   : > { %548 = vmatprep.subr.bf16.mxu0 %v1463_v11  ;;  %v1528_v46 = vld [vmem:[%s2024_s11 + $0x90] ss:$8 sps:$4 sm:$0xff]   ;;  %v1532_v47 = vld [vmem:[%s2024_s11 + $0xa4] ss:$8 sps:$4 sm:$0xff]   ;;  %v1507_v48 = vld [vmem:[%s2017_s14 + $0xc0] ss:$8 sps:$4 sm:$0xff]  }
  0x8a   : > { %782 = vmatpush1.bf16.msra.mxu1 %v1492_v21  ;;  %v1511_v49 = vld [vmem:[%s2017_s14 + $0xd4] ss:$8 sps:$4 sm:$0xff]   ;;  %v1534_v50 = vld [vmem:[%s2024_s11 + $0xa0] ss:$8 sps:$4 sm:$0xff]   ;;  %v1513_v52 = vld [vmem:[%s2017_s14 + $0xd0] ss:$8 sps:$4 sm:$0xff]  }
  0x8b   : > { %783 = vmatprep.subr.bf16.mxu1 %v1496_v22  ;;  %v1535_v51 = vld [vmem:[%s2024_s11 + $0xb4] ss:$8 sps:$4 sm:$0xff]   ;;  %v1517_v53 = vld [vmem:[%s2017_s14 + $0xe4] ss:$8 sps:$4 sm:$0xff]   ;;  %v1537_v54 = vld [vmem:[%s2024_s11 + $0xb0] ss:$8 sps:$4 sm:$0xff]  }
  0x8c   : > { %549 = vmatpush1.bf16.msra.mxu0 %v1465_v14  ;;  %v1519_v55 = vld [vmem:[%s2017_s14 + $0xe0] ss:$8 sps:$4 sm:$0xff]   ;;  %v1538_v56 = vld [vmem:[%s2024_s11 + $0xc4] ss:$8 sps:$4 sm:$0xff]   ;;  %v1523_v57 = vld [vmem:[%s2017_s14 + $0xf4] ss:$8 sps:$4 sm:$0xff]  }
  0x8d   : > { %550 = vmatprep.subr.bf16.mxu0 %v1466_v16  ;;  %v1540_v58 = vld [vmem:[%s2024_s11 + $0xc0] ss:$8 sps:$4 sm:$0xff]   ;;  %v1541_v59 = vld [vmem:[%s2024_s11 + $0xd4] ss:$8 sps:$4 sm:$0xff]   ;;  %v1525_v60 = vld [vmem:[%s2017_s14 + $0xf0] ss:$8 sps:$4 sm:$0xff]  }
  0x8e   : > { %784 = vmatpush1.bf16.msra.mxu1 %v1498_v25  ;;  %v1552_v61 = vld [vmem:[%s2030_s24 + $0x4] ss:$8 sps:$4 sm:$0xff]   ;;  %v1543_v62 = vld [vmem:[%s2024_s11 + $0xd0] ss:$8 sps:$4 sm:$0xff]   ;;  %v1550_v1 = vld [vmem:[%s2030_s24] ss:$8 sps:$4 sm:$0xff]  }
  0x8f   : > { %785 = vmatprep.subr.bf16.mxu1 %v1502_v26  ;;  %v1529_v63 = vld [vmem:[%s2177_s0] ss:$8 sps:$4 sm:$0xff]   ;;  %v1544_v0 = vld [vmem:[%s2024_s11 + $0xe4] ss:$8 sps:$4 sm:$0xff]   ;;  %v1555_v2 = vld [vmem:[%s2030_s24 + $0x14] ss:$8 sps:$4 sm:$0xff]  }
  0x90   : > { %551 = vmatpush1.bf16.msra.mxu0 %v1468_v19  ;;  %v1546_v3 = vld [vmem:[%s2024_s11 + $0xe0] ss:$8 sps:$4 sm:$0xff]   ;;  %v1547_v4 = vld [vmem:[%s2024_s11 + $0xf4] ss:$8 sps:$4 sm:$0xff]   ;;  %v1553_v5 = vld [vmem:[%s2030_s24 + $0x10] ss:$8 sps:$4 sm:$0xff]  }
  0x91   : > { %552 = vmatprep.subr.bf16.mxu0 %v1469_v20  ;;  %v1558_v6 = vld [vmem:[%s2030_s24 + $0x24] ss:$8 sps:$4 sm:$0xff]   ;;  %v1549_v7 = vld [vmem:[%s2024_s11 + $0xf0] ss:$8 sps:$4 sm:$0xff]   ;;  %v1556_v8 = vld [vmem:[%s2030_s24 + $0x20] ss:$8 sps:$4 sm:$0xff]  }
  0x92   : > { %786 = vmatpush1.bf16.msra.mxu1 %v1504_v29  ;;  %v1561_v9 = vld [vmem:[%s2030_s24 + $0x34] ss:$8 sps:$4 sm:$0xff]   ;;  %v1559_v10 = vld [vmem:[%s2030_s24 + $0x30] ss:$8 sps:$4 sm:$0xff]   ;;  %v1564_v11 = vld [vmem:[%s2030_s24 + $0x44] ss:$8 sps:$4 sm:$0xff]  }
  0x93   : > { %787 = vmatprep.subr.bf16.mxu1 %v1508_v30  ;;  %v1562_v12 = vld [vmem:[%s2030_s24 + $0x40] ss:$8 sps:$4 sm:$0xff]   ;;  %v1567_v13 = vld [vmem:[%s2030_s24 + $0x54] ss:$8 sps:$4 sm:$0xff]   ;;  %v1565_v14 = vld [vmem:[%s2030_s24 + $0x50] ss:$8 sps:$4 sm:$0xff]  }
  0x94   : > { %553 = vmatpush1.bf16.msra.mxu0 %v1471_v23  ;;  %v1570_v15 = vld [vmem:[%s2030_s24 + $0x64] ss:$8 sps:$4 sm:$0xff]   ;;  %v1568_v16 = vld [vmem:[%s2030_s24 + $0x60] ss:$8 sps:$4 sm:$0xff]   ;;  %v1573_v17 = vld [vmem:[%s2030_s24 + $0x74] ss:$8 sps:$4 sm:$0xff]  }
  0x95   : > { %554 = vmatprep.subr.bf16.mxu0 %v1475_v24  ;;  %v1571_v18 = vld [vmem:[%s2030_s24 + $0x70] ss:$8 sps:$4 sm:$0xff]   ;;  %v1576_v19 = vld [vmem:[%s2030_s24 + $0x84] ss:$8 sps:$4 sm:$0xff]   ;;  %v1574_v20 = vld [vmem:[%s2030_s24 + $0x80] ss:$8 sps:$4 sm:$0xff]  }
  0x96   : > { %788 = vmatpush1.bf16.msra.mxu1 %v1510_v33  ;;  %v1579_v21 = vld [vmem:[%s2030_s24 + $0x94] ss:$8 sps:$4 sm:$0xff]   ;;  %v1577_v22 = vld [vmem:[%s2030_s24 + $0x90] ss:$8 sps:$4 sm:$0xff]   ;;  %v1582_v23 = vld [vmem:[%s2030_s24 + $0xa4] ss:$8 sps:$4 sm:$0xff]  }
  0x97   : > { %789 = vmatprep.subr.bf16.mxu1 %v1514_v34  ;;  %v1580_v24 = vld [vmem:[%s2030_s24 + $0xa0] ss:$8 sps:$4 sm:$0xff]   ;;  %v1585_v25 = vld [vmem:[%s2030_s24 + $0xb4] ss:$8 sps:$4 sm:$0xff]   ;;  %v1583_v26 = vld [vmem:[%s2030_s24 + $0xb0] ss:$8 sps:$4 sm:$0xff]  }
  0x98   : > { %555 = vmatpush1.bf16.msra.mxu0 %v1477_v27  ;;  %v1588_v27 = vld [vmem:[%s2030_s24 + $0xc4] ss:$8 sps:$4 sm:$0xff]   ;;  %v1591_v29 = vld [vmem:[%s2030_s24 + $0xd4] ss:$8 sps:$4 sm:$0xff]   ;;  %v1589_v30 = vld [vmem:[%s2030_s24 + $0xd0] ss:$8 sps:$4 sm:$0xff]  }
  0x99   : > { %556 = vmatprep.subr.bf16.mxu0 %v1481_v28  ;;  %v1586_v28 = vld [vmem:[%s2030_s24 + $0xc0] ss:$8 sps:$4 sm:$0xff]   ;;  %v1597_v33 = vld [vmem:[%s2030_s24 + $0xf4] ss:$8 sps:$4 sm:$0xff]   ;;  %v1595_v34 = vld [vmem:[%s2030_s24 + $0xf0] ss:$8 sps:$4 sm:$0xff]  }
  0x9a   : > { %790 = vmatpush1.bf16.msra.mxu1 %v1516_v38  ;;  %p1364_p3 = scmp.ne.s32.totalorder %s1780_s18, 1 }
  0x9b   : > { %791 = vmatprep.subr.bf16.mxu1 %v1520_v39 }
  0x9c   : > { %557 = vmatpush1.bf16.msra.mxu0 %v1483_v31  ;;  %v1594_v31 = vld [vmem:[%s2030_s24 + $0xe4] ss:$8 sps:$4 sm:$0xff]  }
  0x9d   : > { %558 = vmatprep.subr.bf16.mxu0 %v1487_v32  ;;  %v1592_v32 = vld [vmem:[%s2030_s24 + $0xe0] ss:$8 sps:$4 sm:$0xff]  }
  0x9e   : > { %792 = vmatpush1.bf16.msra.mxu1 %v1522_v42 }
  0x9f   : > { %793 = vmatprep.subr.bf16.mxu1 %v1526_v43 }
  0xa0   : > { %559 = vmatpush1.bf16.msra.mxu0 %v1489_v35 }
  0xa1   : > { %560 = vmatprep.subr.bf16.mxu0 %v1493_v37 }
  0xa2   : > { %794 = vmatpush1.bf16.msra.mxu1 %v1528_v46 }
  0xa3   : > { %795 = vmatprep.subr.bf16.mxu1 %v1532_v47 }
  0xa4   : > { %561 = vmatpush1.bf16.msra.mxu0 %v1495_v40 }
  0xa5   : > { %562 = vmatprep.subr.bf16.mxu0 %v1499_v41 }
  0xa6   : > { %796 = vmatpush1.bf16.msra.mxu1 %v1534_v50 }
  0xa7   : > { %797 = vmatprep.subr.bf16.mxu1 %v1535_v51 }
  0xa8   : > { %563 = vmatpush1.bf16.msra.mxu0 %v1501_v44 }
  0xa9   : > { %564 = vmatprep.subr.bf16.mxu0 %v1505_v45 }
  0xaa   : > { %798 = vmatpush1.bf16.msra.mxu1 %v1537_v54 }
  0xab   : > { %799 = vmatprep.subr.bf16.mxu1 %v1538_v56 }
  0xac   : > { %565 = vmatpush1.bf16.msra.mxu0 %v1507_v48 }
  0xad   : > { %566 = vmatprep.subr.bf16.mxu0 %v1511_v49 }
  0xae   : > { %800 = vmatpush1.bf16.msra.mxu1 %v1540_v58 }
  0xaf   : > { %801 = vmatprep.subr.bf16.mxu1 %v1541_v59 }
  0xb0   : > { %567 = vmatpush1.bf16.msra.mxu0 %v1513_v52 }
  0xb1   : > { %568 = vmatprep.subr.bf16.mxu0 %v1517_v53 }
  0xb2   : > { %802 = vmatpush1.bf16.msra.mxu1 %v1543_v62 }
  0xb3   : > { %803 = vmatprep.subr.bf16.mxu1 %v1544_v0 }
  0xb4   : > { %569 = vmatpush1.bf16.msra.mxu0 %v1519_v55 }
  0xb5   : > { %570 = vmatprep.subr.bf16.mxu0 %v1523_v57 }
  0xb6   : > { %804 = vmatpush1.bf16.msra.mxu1 %v1546_v3 }
  0xb7   : > { %805 = vmatprep.subr.bf16.mxu1 %v1547_v4 }
  0xb8   : > { %571 = vmatpush1.bf16.msra.mxu0 %v1525_v60 }
  0xb9   : > { %1048 = vmatprep.subr.bf16.mxu0 %v1552_v61 }
  0xba   : > { %806 = vmatpush1.bf16.msra.mxu1 %v1549_v7 }
  0xbb   : > { %573 = vmatmul.mubr.bf16.vlgmr.msra.gmra.mrb[0].mxu0 %v1529_v63 }
  0xbc   : > { %1049 = vmatpush1.bf16.msra.mxu0 %v1550_v1 }
  0xbd   : > { %1050 = vmatprep.subr.bf16.mxu0 %v1555_v2  ;;  %808 = vmatmul.mubr.bf16.vlgmr.msra.gmra.mrb[0].mxu1 %v1529_v63 }
  0xc0   : > { %1051 = vmatpush1.bf16.msra.mxu0 %v1553_v5  ;;  %v850_v5 = vld [vmem:[#allocation2] sm:$0xff] }
  0xc1   : > { %1052 = vmatprep.subr.bf16.mxu0 %v1558_v6  ;;  %v851_v6 = vld [vmem:[#allocation2 + $0x8] sm:$0xff] }
  0xc4   : > { %1053 = vmatpush1.bf16.msra.mxu0 %v1556_v8  ;;  %v852_v8 = vld [vmem:[#allocation2 + $0x10] sm:$0xff] }
  0xc5   : > { %1054 = vmatprep.subr.bf16.mxu0 %v1561_v9 }
  0xc8   : > { %1055 = vmatpush1.bf16.msra.mxu0 %v1559_v10 }
  0xc9   : > { %1056 = vmatprep.subr.bf16.mxu0 %v1564_v11  ;;  %v853_v11 = vld [vmem:[#allocation2 + $0x18] sm:$0xff] }
  0xcc   : > { %1057 = vmatpush1.bf16.msra.mxu0 %v1562_v12 }
  0xcd   : > { %1058 = vmatprep.subr.bf16.mxu0 %v1567_v13 }
  0xd0   : > { %1059 = vmatpush1.bf16.msra.mxu0 %v1565_v14 }
  0xd1   : > { %1060 = vmatprep.subr.bf16.mxu0 %v1570_v15 }
  0xd4   : > { %1061 = vmatpush1.bf16.msra.mxu0 %v1568_v16 }
  0xd5   : > { %1062 = vmatprep.subr.bf16.mxu0 %v1573_v17 }
  0xd8   : > { %1063 = vmatpush1.bf16.msra.mxu0 %v1571_v18 }
  0xd9   : > { %1064 = vmatprep.subr.bf16.mxu0 %v1576_v19 }
  0xdc   : > { %1065 = vmatpush1.bf16.msra.mxu0 %v1574_v20 }
  0xdd   : > { %1066 = vmatprep.subr.bf16.mxu0 %v1579_v21 }
  0xe0   : > { %1067 = vmatpush1.bf16.msra.mxu0 %v1577_v22 }
  0xe1   : > { %1068 = vmatprep.subr.bf16.mxu0 %v1582_v23 }
  0xe4   : > { %1069 = vmatpush1.bf16.msra.mxu0 %v1580_v24 }
  0xe5   : > { %1070 = vmatprep.subr.bf16.mxu0 %v1585_v25 }
  0xe8   : > { %1071 = vmatpush1.bf16.msra.mxu0 %v1583_v26 }
  0xe9   : > { %1072 = vmatprep.subr.bf16.mxu0 %v1588_v27 }
  0xec   : > { %1073 = vmatpush1.bf16.msra.mxu0 %v1586_v28 }
  0xed   : > { %1074 = vmatprep.subr.bf16.mxu0 %v1591_v29 }
  0xf0   : > { %1075 = vmatpush1.bf16.msra.mxu0 %v1589_v30 }
  0xf1   : > { %1076 = vmatprep.subr.bf16.mxu0 %v1594_v31 }
  0xf4   : > { %1077 = vmatpush1.bf16.msra.mxu0 %v1592_v32 }
  0xf5   : > { %1078 = vmatprep.subr.bf16.mxu0 %v1597_v33 }
  0xf8   : > { %1079 = vmatpush1.bf16.msra.mxu0 %v1595_v34 }
 0x18e   : > { %v574_v35 = vpop.f32.mrb[0].mxu0 }
 0x18f   : > { %v1328_v36 = vmul.f32 -1.442695, %v574_v35  ;;  %v576_v37 = vpop.f32.mrb[1].mxu0 }
 0x190   : > { %v1329_v38 = vmul.f32 -1.442695, %v576_v37  ;;  %v578_v39 = vpop.f32.mrb[2].mxu0  ;;  %v809_v43 = vpop.f32.mrb[0].mxu1 }
 0x191   : > { %1598 = vpow2.f32 %v1328_v36  ;;  %v1330_v40 = vmul.f32 -1.442695, %v578_v39  ;;  %v580_v41 = vpop.f32.mrb[3].mxu0  ;;  %v811_v44 = vpop.f32.mrb[1].mxu1 }
 0x192   : > { %1600 = vpow2.f32 %v1329_v38  ;;  %v1331_v42 = vmul.f32 -1.442695, %v580_v41  ;;  %v813_v45 = vpop.f32.mrb[2].mxu1 }
 0x193   : > { %1602 = vpow2.f32 %v1330_v40  ;;  %v815_v47 = vpop.f32.mrb[3].mxu1 }
 0x194   : > { %1604 = vpow2.f32 %v1331_v42 }
 0x19b   : > { %v1599_v46 = vpop.eup %1598 }
 0x19c   : > { %v1601_v48 = vpop.eup %1600  ;;  %v830_v49 = vadd.f32 1.0, %v1599_v46 }
 0x19d   : > { %v1603_v50 = vpop.eup %1602  ;;  %v831_v51 = vadd.f32 1.0, %v1601_v48 }
 0x19e   : > { %v1605_v52 = vpop.eup %1604  ;;  %1606 = vrcp.f32 %v830_v49  ;;  %v832_v53 = vadd.f32 1.0, %v1603_v50 }
 0x19f   : > { %1608 = vrcp.f32 %v831_v51  ;;  %v833_v54 = vadd.f32 1.0, %v1605_v52 }
 0x1a0   : > { %1610 = vrcp.f32 %v832_v53 }
 0x1a1   : > { %1612 = vrcp.f32 %v833_v54 }
 0x1a8   : > { %v1607_v55 = vpop.eup %1606 }
 0x1a9   : > { %v1609_v56 = vpop.eup %1608  ;;  %v842_v57 = vmul.f32 %v1607_v55, %v574_v35 }
 0x1aa   : > { %v1611_v58 = vpop.eup %1610  ;;  %v843_v59 = vmul.f32 %v1609_v56, %v576_v37 }
 0x1ab   : > { %v1613_v60 = vpop.eup %1612  ;;  %v844_v61 = vmul.f32 %v1611_v58, %v578_v39  ;;  %v846_v62 = vmul.f32 %v842_v57, %v809_v43 }
 0x1ac   : > { %v845_v63 = vmul.f32 %v1613_v60, %v580_v41  ;;  %v847_v0 = vmul.f32 %v843_v59, %v811_v44 }
 0x1ad   : > { %v848_v1 = vmul.f32 %v844_v61, %v813_v45 }
 0x1ae   : > { %v849_v2 = vmul.f32 %v845_v63, %v815_v47 }
 0x1af   : > { %v854_v3 = vpack.c.bf16 %v848_v1, %v846_v62 }
 0x1b0   : > { %v855_v4 = vpack.c.bf16 %v849_v2, %v847_v0 }
 0x1b2   : > { %1080 = vmatprep.mubr.bf16.mxu0 %v855_v4 }
 0x1b3   : > { %1081 = vmatmul.mubr.bf16.vlgmr.msra.gmra.mrb[4].mxu0 %v854_v3 }
 0x286   : > { %v1082_v7 = vpop.f32.mrb[4].mxu0  ;;  %1102 = sbr.rel (%p1364_p3) target bundleno = 661 (0x295), region = 56 }
 0x287   : > { %v1091_v9 = vadd.f32 %v1082_v7, %v850_v5  ;;  %v1084_v10 = vpop.f32.mrb[5].mxu0 }
 0x288   : > { %v1092_v12 = vadd.f32 %v1084_v10, %v851_v6  ;;  %v1086_v13 = vpop.f32.mrb[6].mxu0 }
 0x289   : > { %1095 = vst [vmem:[#allocation2] sm:$0xff] %v1091_v9  ;;  %v1093_v14 = vadd.f32 %v1086_v13, %v852_v8  ;;  %v1088_v15 = vpop.f32.mrb[7].mxu0 }
 0x28a   : > { %1096 = vst [vmem:[#allocation2 + $0x8] sm:$0xff] %v1092_v12  ;;  %v1094_v16 = vadd.f32 %v1088_v15, %v853_v11 }
 0x28b   : > { %1097 = vst [vmem:[#allocation2 + $0x10] sm:$0xff] %v1093_v14 }
 0x28c   : > { %1098 = vst [vmem:[#allocation2 + $0x18] sm:$0xff] %v1094_v16 }
 0x290   : > { %v1103_v17 = vld [vmem:[#allocation2] sm:$0xff] }
 0x291   : > { %v1104_v18 = vld [vmem:[#allocation2 + $0x8] sm:$0xff]  ;;  %1107 = vst [vmem:[#allocation9] sm:$0xff] %v1103_v17 }
 0x292   : > { %v1105_v19 = vld [vmem:[#allocation2 + $0x10] sm:$0xff]  ;;  %1108 = vst [vmem:[#allocation9 + $0x8] sm:$0xff] %v1104_v18 }
 0x293   : > { %1109 = vst [vmem:[#allocation9 + $0x10] sm:$0xff] %v1105_v19  ;;  %v1106_v20 = vld [vmem:[#allocation2 + $0x18] sm:$0xff] }
 0x294   : > { %1110 = vst [vmem:[#allocation9 + $0x18] sm:$0xff] %v1106_v20 }
 0x295 PF: > { %p1394_p7 = scmp.eq.s32.totalorder %s1854_s21, 1  ;;  %s1797_s15 = smov [#allocation9]  }
 0x296   : > { %s1121_s28 = sshll.u32 %s1797_s15, 4  ;;  %s1122_s28 = int_to_ptr.vmem [resolvable:$true] %s1121_s28 }
 0x297   : > { %s1704_s8 = scalar_lea.vmem %s1122_s28, 512  ;;  %p1711_p6 = scmp.lt.s32.totalorder %s1122_s28, %s1122_s28 }
 0x298   : > { %p1705_p10 = scmp.ne.s32.totalorder %s1122_s28, %s1704_s8  ;;  %p1712_p8 = scmp.lt.s32.totalorder %s1704_s8, %s1704_s8 }
 0x29a   : > { %p1706_p1 = pnand %p1705_p10, %p1394_p7  ;;  %p1713_p11 = por %p1712_p8, %p1711_p6 }
 0x29c   : > { %p1707_p4 = pneg %p1706_p1 }
 0x29e   : > { %p1714_p5 = pnand %p1713_p11, %p1707_p4 }
 0x2a0   : > { %1717 = shalt.err (!%p1714_p5)
}
 0x2a1   : > { %s1718_s5 = scalar_lea.hbm %s2181_s4, 512 }
 0x2a2   : > { %p1719_p0 = scmp.ne.s32.totalorder %s2181_s4, %s1718_s5  ;;  %p1724_p12 = scmp.lt.u32.totalorder %s1718_s5, %s2181_s4 }
 0x2a4   : > { %p1720_p2 = pnand %p1719_p0, %p1394_p7 }
 0x2a6   : > { %p1721_p13 = pneg %p1720_p2 }
 0x2a8   : > { %p1726_p9 = pnand %p1724_p12, %p1721_p13 }
 0x2aa   : > { %1729 = shalt.err (!%p1726_p9)
}
 0x2ab   : > { %s1798_s7 = smov 256   ;;  %s1799_s14 = smov 16  }
 0x2ac   : > { %1380 = dma.vmem_to_hbm [thread:$0]  (%p1394_p7), %s1122_s28, 512, %s2181_s4, [#allocation5], %s1798_s7, %s1798_s7, %s1799_s14  }
 0x2ad   : > { %1763 = dma.done.wait (%p1394_p7), [#allocation5], 512  }
 0x2ae   : > { %1765 = vsyncadd (%p1394_p7), [#allocation5], 4294966784 }
 0x2af PF: > { %s21_s20 = sadd.s32 1, %s1788_s20   ;;  %s2201_s15 = smov %s1772_s16 }
 0x2b0   : > { %p18_p3 = scmp.ge.s32.totalorder %s21_s20, 4   ;;  %s2202_s16 = smov %s1776_s17 }
 0x2b1   : > { %s2203_s17 = smov %s1873_s26  ;;  %s2204_s18 = smov %s1784_s19 }
 0x2b2   : > { %s2205_s19 = smov %s2207_s22  ;;  %20 = sbr.rel (!%p18_p3) target bundleno = 9 (0x9), region = 109 }
 0x2b9   :  { %1137 = vsyncpa [#allocation4], 1 }
 0x2ba   :  { %1139 = vsyncpa [#allocation4 + $0x1], 1 }
 0x2bb   :  { %1140 = vsyncpa [#allocation7], 1 }
 0x2bc   :  { %1142 = vsyncpa [#allocation7 + $0x1], 1 }
 0x2bd   :  { %1143 = vsyncpa [#allocation5], 1 }
 0x2be   :  { %1145 = vsyncpa [#allocation5 + $0x1], 1 }

</bundles_post_ra>
